<compile_context>
chip_gen: v7x
topology: tpu7x:2x2x1
jax: 0.10.0
libtpu: 0.0.40
codegen_flags: <defaults>
</compile_context>

<pallas_src>
import functools

import jax
import jax.numpy as jnp
from jax.experimental import pallas as pl
from jax.experimental.pallas import tpu as pltpu


def _residual_block_kernel(x_ref, w1_ref, b1_ref, w2_ref, b2_ref, mask_ref, out_ref,
                           *, W, ksize):
    """Fused conv -> bias -> ReLU -> conv -> bias -> residual add for one sample.

    x_ref   : (C, H*W)        NCHW input with spatial dims flattened on lanes
    w1_ref  : (C, kk*C)       conv1 weights, column index = tap*C + in_channel
    b1_ref  : (C, 1)
    w2_ref  : (C, kk*C)
    b2_ref  : (C, 1)
    mask_ref: (kk*C, H*W)     "same"-padding validity mask (stack layout)
    out_ref : (C, H*W)
    """
    C, HW = x_ref.shape
    p = ksize // 2

    # Hoisted loads: everything fits in a handful of vregs, read once per step.
    x = x_ref[...]             # (C, HW) f32
    w1 = w1_ref[...]           # (C, kk*C)
    w2 = w2_ref[...]
    b1 = b1_ref[...]           # (C, 1), broadcasts over lanes
    b2 = b2_ref[...]
    mask = mask_ref[...]       # (kk*C, HW)

    def im2col(v):
        # Stack of shifted planes, tap-major / channel-minor, matching the weight
        # layout built in the wrapper.  pltpu.roll is a lane rotation on the XLU;
        # wrapped / out-of-image elements are zeroed by the mask multiply below.
        planes = []
        for ky in range(ksize):
            for kx in range(ksize):
                off = (ky - p) * W + (kx - p)           # flat lane shift for this tap
                if off == 0:
                    planes.append(v)
                else:
                    planes.append(pltpu.roll(v, (-off) % HW, axis=1))
        return jnp.concatenate(planes, axis=0) * mask   # (kk*C, HW)

    # conv1 + bias + ReLU, then conv2 + bias -- each conv is a single MXU matmul.
    h = jnp.dot(w1, im2col(x), preferred_element_type=jnp.float32) + b1
    h = jnp.maximum(h, 0.0)
    y = jnp.dot(w2, im2col(h), preferred_element_type=jnp.float32) + b2

    out_ref[...] = (x + y).astype(out_ref.dtype)        # residual add


def residual_block(x_nchw, w1_oihw, b1, w2_oihw, b2):
    """NCHW in / NCHW out, matching the PyTorch module semantics."""
    N, C, H, W = x_nchw.shape
    kH, kW = int(w1_oihw.shape[2]), int(w1_oihw.shape[3])
    assert kH == kW and kH % 2 == 1, "odd square kernel expected (same padding)"
    assert w2_oihw.shape == w1_oihw.shape
    kk = kH * kW
    HW = H * W
    p = kH // 2

    # Free reshape only for the activations -- no spatial pre-pad, no transpose.
    x2 = x_nchw.reshape(N, C, HW).astype(jnp.float32)

    # Weights re-laid as (C_out, tap*C_in + c_in) so one matmul per conv matches the
    # im2col stack built in the kernel.  (Tiny tensors; negligible wrapper cost.)
    w1_2d = jnp.transpose(w1_oihw, (0, 2, 3, 1)).reshape(C, kk * C).astype(jnp.float32)
    w2_2d = jnp.transpose(w2_oihw, (0, 2, 3, 1)).reshape(C, kk * C).astype(jnp.float32)
    b1c = b1.reshape(C, 1).astype(jnp.float32)
    b2c = b2.reshape(C, 1).astype(jnp.float32)

    # Precomputed "same"-padding validity mask per tap, expanded to stack layout:
    # kills both row wrap-around (W axis) and top/bottom out-of-image rows of the
    # flat lane rotation.  Constant of the problem shape, resident in VMEM.
    j = jnp.arange(HW, dtype=jnp.int32)
    col = j % W
    tap_rows = []
    for ky in range(kH):
        for kx in range(kW):
            dy, dx = ky - p, kx - p
            off = dy * W + dx
            ok = ((col + dx >= 0) & (col + dx < W) &
                  (j + off >= 0) & (j + off < HW))
            tap_rows.append(ok)
    tap_mask = jnp.stack(tap_rows, axis=0).astype(jnp.float32)   # (kk, HW)
    mask = jnp.repeat(tap_mask, C, axis=0)                       # (kk*C, HW)

    kernel = functools.partial(_residual_block_kernel, W=W, ksize=kH)

    flops = 2 * 2 * N * HW * C * C * kk                # two convs, MAC = 2 flops
    bytes_accessed = (2 * N * C * HW + 2 * C * kk * C + 2 * C + kk * C * HW) * 4

    out2 = pl.pallas_call(
        kernel,
        grid=(N,),
        in_specs=[
            pl.BlockSpec((None, C, HW), lambda n: (n, 0, 0)),    # x (batch-tiled)
            pl.BlockSpec((C, kk * C), lambda n: (0, 0)),         # w1 (resident)
            pl.BlockSpec((C, 1), lambda n: (0, 0)),              # b1
            pl.BlockSpec((C, kk * C), lambda n: (0, 0)),         # w2
            pl.BlockSpec((C, 1), lambda n: (0, 0)),              # b2
            pl.BlockSpec((kk * C, HW), lambda n: (0, 0)),        # padding mask
        ],
        out_specs=pl.BlockSpec((None, C, HW), lambda n: (n, 0, 0)),
        out_shape=jax.ShapeDtypeStruct((N, C, HW), jnp.float32),
        compiler_params=pltpu.CompilerParams(
            dimension_semantics=("parallel",)),
        cost_estimate=pl.CostEstimate(flops=flops, transcendentals=0,
                                      bytes_accessed=bytes_accessed),
    )(x2, w1_2d, b1c, w2_2d, b2c, mask)

    return out2.reshape(N, C, H, W)


def _reference(x_nchw, w1, b1, w2, b2):
    """Pure-JAX reference using lax conv (NCHW / OIHW, same as PyTorch)."""
    dn = jax.lax.conv_dimension_numbers(x_nchw.shape, w1.shape,
                                        ('NCHW', 'OIHW', 'NCHW'))
    p = w1.shape[2] // 2
    h = jax.lax.conv_general_dilated(x_nchw, w1, (1, 1), [(p, p), (p, p)],
                                     dimension_numbers=dn)
    h = h + b1.reshape(1, -1, 1, 1)
    h = jnp.maximum(h, 0.0)
    y = jax.lax.conv_general_dilated(h, w2, (1, 1), [(p, p), (p, p)],
                                     dimension_numbers=dn)
    y = y + b2.reshape(1, -1, 1, 1)
    return x_nchw + y


if __name__ == "__main__":
    # small shapes consistent with the module
    N, C, H, W = 2, 4, 16, 16
    ksize = 3

    key = jax.random.PRNGKey(0)
    k_x, k_w1, k_b1, k_w2, k_b2 = jax.random.split(key, 5)

    x = jax.random.normal(k_x, (N, C, H, W), dtype=jnp.float32)
    fan_in = C * ksize * ksize
    scale = 1.0 / jnp.sqrt(fan_in)
    w1 = jax.random.normal(k_w1, (C, C, ksize, ksize), dtype=jnp.float32) * scale
    b1 = jax.random.normal(k_b1, (C,), dtype=jnp.float32) * scale
    w2 = jax.random.normal(k_w2, (C, C, ksize, ksize), dtype=jnp.float32) * scale
    b2 = jax.random.normal(k_b2, (C,), dtype=jnp.float32) * scale

    out = residual_block(x, w1, b1, w2, b2)
    out = jax.block_until_ready(out)

    ref = jax.block_until_ready(_reference(x, w1, b1, w2, b2))
    assert out.shape == (N, C, H, W)
    assert jnp.allclose(out, ref, atol=1e-4, rtol=1e-4), \
        f"max abs err {jnp.max(jnp.abs(out - ref))}"

    print("KERNEL_OK")
</pallas_src>

<mosaic_0001>
module attributes {stable_mosaic.version = 11 : i64} {
  func.func @_residual_block_kernel(%arg0: i32, %arg1: memref<1x4x256xf32, #tpu.memory_space<vmem>>, %arg2: memref<4x36xf32, #tpu.memory_space<vmem>>, %arg3: memref<4x1xf32, #tpu.memory_space<vmem>>, %arg4: memref<4x36xf32, #tpu.memory_space<vmem>>, %arg5: memref<4x1xf32, #tpu.memory_space<vmem>>, %arg6: memref<36x256xf32, #tpu.memory_space<vmem>>, %arg7: memref<1x4x256xf32, #tpu.memory_space<vmem>>) attributes {dimension_semantics = [#tpu.dimension_semantics<parallel>], iteration_bounds = array<i64: 2>, scalar_prefetch = 0 : i64, scratch_operands = 0 : i64, tpu.core_type = #tpu.core_type<tc>, window_params = [{transform_indices = @transform_0, window_bounds = array<i64: 1, 4, 256>}, {pipeline_mode = #tpu.pipeline_mode<synchronous>, transform_indices = @transform_1, window_bounds = array<i64: 4, 36>}, {pipeline_mode = #tpu.pipeline_mode<synchronous>, transform_indices = @transform_2, window_bounds = array<i64: 4, 1>}, {pipeline_mode = #tpu.pipeline_mode<synchronous>, transform_indices = @transform_3, window_bounds = array<i64: 4, 36>}, {pipeline_mode = #tpu.pipeline_mode<synchronous>, transform_indices = @transform_4, window_bounds = array<i64: 4, 1>}, {pipeline_mode = #tpu.pipeline_mode<synchronous>, transform_indices = @transform_5, window_bounds = array<i64: 36, 256>}, {transform_indices = @transform_6, window_bounds = array<i64: 1, 4, 256>}]} {
    %c0 = arith.constant 0 : index
    %c0_0 = arith.constant 0 : index
    %c0_1 = arith.constant 0 : index
    %0 = vector.load %arg1[%c0, %c0_0, %c0_1] : memref<1x4x256xf32, #tpu.memory_space<vmem>>, vector<1x4x256xf32>
    %1 = vector.shape_cast %0 : vector<1x4x256xf32> to vector<4x256xf32>
    %c0_2 = arith.constant 0 : index
    %c0_3 = arith.constant 0 : index
    %2 = vector.load %arg2[%c0_2, %c0_3] : memref<4x36xf32, #tpu.memory_space<vmem>>, vector<4x36xf32>
    %c0_4 = arith.constant 0 : index
    %c0_5 = arith.constant 0 : index
    %3 = vector.load %arg4[%c0_4, %c0_5] : memref<4x36xf32, #tpu.memory_space<vmem>>, vector<4x36xf32>
    %c0_6 = arith.constant 0 : index
    %c0_7 = arith.constant 0 : index
    %4 = vector.load %arg3[%c0_6, %c0_7] : memref<4x1xf32, #tpu.memory_space<vmem>>, vector<4x1xf32>
    %c0_8 = arith.constant 0 : index
    %c0_9 = arith.constant 0 : index
    %5 = vector.load %arg5[%c0_8, %c0_9] : memref<4x1xf32, #tpu.memory_space<vmem>>, vector<4x1xf32>
    %c0_10 = arith.constant 0 : index
    %c0_11 = arith.constant 0 : index
    %6 = vector.load %arg6[%c0_10, %c0_11] : memref<36x256xf32, #tpu.memory_space<vmem>>, vector<36x256xf32>
    %c17_i32 = arith.constant 17 : i32
    %7 = tpu.dynamic_rotate %1 by %c17_i32 dim 1 : vector<4x256xf32>, i32 -> vector<4x256xf32>
    %c16_i32 = arith.constant 16 : i32
    %8 = tpu.dynamic_rotate %1 by %c16_i32 dim 1 : vector<4x256xf32>, i32 -> vector<4x256xf32>
    %c15_i32 = arith.constant 15 : i32
    %9 = tpu.dynamic_rotate %1 by %c15_i32 dim 1 : vector<4x256xf32>, i32 -> vector<4x256xf32>
    %c1_i32 = arith.constant 1 : i32
    %10 = tpu.dynamic_rotate %1 by %c1_i32 dim 1 : vector<4x256xf32>, i32 -> vector<4x256xf32>
    %c255_i32 = arith.constant 255 : i32
    %11 = tpu.dynamic_rotate %1 by %c255_i32 dim 1 : vector<4x256xf32>, i32 -> vector<4x256xf32>
    %c241_i32 = arith.constant 241 : i32
    %12 = tpu.dynamic_rotate %1 by %c241_i32 dim 1 : vector<4x256xf32>, i32 -> vector<4x256xf32>
    %c240_i32 = arith.constant 240 : i32
    %13 = tpu.dynamic_rotate %1 by %c240_i32 dim 1 : vector<4x256xf32>, i32 -> vector<4x256xf32>
    %c239_i32 = arith.constant 239 : i32
    %14 = tpu.dynamic_rotate %1 by %c239_i32 dim 1 : vector<4x256xf32>, i32 -> vector<4x256xf32>
    %15 = tpu.concatenate %7, %8, %9, %10, %1, %11, %12, %13, %14 in 0 : vector<4x256xf32>, vector<4x256xf32>, vector<4x256xf32>, vector<4x256xf32>, vector<4x256xf32>, vector<4x256xf32>, vector<4x256xf32>, vector<4x256xf32>, vector<4x256xf32> -> vector<36x256xf32>
    %16 = arith.mulf %15, %6 : vector<36x256xf32>
    %cst = arith.constant dense<0.000000e+00> : vector<4x256xf32>
    %17 = tpu.matmul %2, %16, %cst {dimension_numbers = #tpu.dot_dimension_numbers<[1], [0], [0], [1], [0, 0, 1, 1], [], []>} : vector<4x36xf32>, vector<36x256xf32>, vector<4x256xf32> -> vector<4x256xf32>
    %18 = vector.broadcast %4 : vector<4x1xf32> to vector<4x256xf32>
    %19 = arith.addf %17, %18 : vector<4x256xf32>
    %cst_12 = arith.constant 0.000000e+00 : f32
    %20 = vector.broadcast %cst_12 : f32 to vector<4x256xf32>
    %21 = arith.maximumf %19, %20 : vector<4x256xf32>
    %c17_i32_13 = arith.constant 17 : i32
    %22 = tpu.dynamic_rotate %21 by %c17_i32_13 dim 1 : vector<4x256xf32>, i32 -> vector<4x256xf32>
    %c16_i32_14 = arith.constant 16 : i32
    %23 = tpu.dynamic_rotate %21 by %c16_i32_14 dim 1 : vector<4x256xf32>, i32 -> vector<4x256xf32>
    %c15_i32_15 = arith.constant 15 : i32
    %24 = tpu.dynamic_rotate %21 by %c15_i32_15 dim 1 : vector<4x256xf32>, i32 -> vector<4x256xf32>
    %c1_i32_16 = arith.constant 1 : i32
    %25 = tpu.dynamic_rotate %21 by %c1_i32_16 dim 1 : vector<4x256xf32>, i32 -> vector<4x256xf32>
    %c255_i32_17 = arith.constant 255 : i32
    %26 = tpu.dynamic_rotate %21 by %c255_i32_17 dim 1 : vector<4x256xf32>, i32 -> vector<4x256xf32>
    %c241_i32_18 = arith.constant 241 : i32
    %27 = tpu.dynamic_rotate %21 by %c241_i32_18 dim 1 : vector<4x256xf32>, i32 -> vector<4x256xf32>
    %c240_i32_19 = arith.constant 240 : i32
    %28 = tpu.dynamic_rotate %21 by %c240_i32_19 dim 1 : vector<4x256xf32>, i32 -> vector<4x256xf32>
    %c239_i32_20 = arith.constant 239 : i32
    %29 = tpu.dynamic_rotate %21 by %c239_i32_20 dim 1 : vector<4x256xf32>, i32 -> vector<4x256xf32>
    %30 = tpu.concatenate %22, %23, %24, %25, %21, %26, %27, %28, %29 in 0 : vector<4x256xf32>, vector<4x256xf32>, vector<4x256xf32>, vector<4x256xf32>, vector<4x256xf32>, vector<4x256xf32>, vector<4x256xf32>, vector<4x256xf32>, vector<4x256xf32> -> vector<36x256xf32>
    %31 = arith.mulf %30, %6 : vector<36x256xf32>
    %cst_21 = arith.constant dense<0.000000e+00> : vector<4x256xf32>
    %32 = tpu.matmul %3, %31, %cst_21 {dimension_numbers = #tpu.dot_dimension_numbers<[1], [0], [0], [1], [0, 0, 1, 1], [], []>} : vector<4x36xf32>, vector<36x256xf32>, vector<4x256xf32> -> vector<4x256xf32>
    %33 = vector.broadcast %5 : vector<4x1xf32> to vector<4x256xf32>
    %34 = arith.addf %32, %33 : vector<4x256xf32>
    %35 = arith.addf %1, %34 : vector<4x256xf32>
    %c0_22 = arith.constant 0 : index
    %c0_23 = arith.constant 0 : index
    %c0_24 = arith.constant 0 : index
    %36 = vector.load %arg7[%c0_22, %c0_23, %c0_24] : memref<1x4x256xf32, #tpu.memory_space<vmem>>, vector<1x4x256xf32>
    %37 = vector.shape_cast %36 : vector<1x4x256xf32> to vector<4x256xf32>
    %38 = vector.shape_cast %35 : vector<4x256xf32> to vector<1x4x256xf32>
    tpu.vector_store %arg7[%c0_22, %c0_23, %c0_24], %38 {strides = array<i32>} : memref<1x4x256xf32, #tpu.memory_space<vmem>>, vector<1x4x256xf32>,
    return
  }
  func.func @transform_0(%arg0: i32) -> (i32, i32, i32) {
    %c0_i32 = arith.constant 0 : i32
    %c0_i32_0 = arith.constant 0 : i32
    %c0_i32_1 = arith.constant 0 : i32
    return %arg0, %c0_i32, %c0_i32_0 : i32, i32, i32
  }
  func.func @transform_1(%arg0: i32) -> (i32, i32) {
    %c0_i32 = arith.constant 0 : i32
    %c0_i32_0 = arith.constant 0 : i32
    %c0_i32_1 = arith.constant 0 : i32
    return %c0_i32, %c0_i32_0 : i32, i32
  }
  func.func @transform_2(%arg0: i32) -> (i32, i32) {
    %c0_i32 = arith.constant 0 : i32
    %c0_i32_0 = arith.constant 0 : i32
    %c0_i32_1 = arith.constant 0 : i32
    return %c0_i32, %c0_i32_0 : i32, i32
  }
  func.func @transform_3(%arg0: i32) -> (i32, i32) {
    %c0_i32 = arith.constant 0 : i32
    %c0_i32_0 = arith.constant 0 : i32
    %c0_i32_1 = arith.constant 0 : i32
    return %c0_i32, %c0_i32_0 : i32, i32
  }
  func.func @transform_4(%arg0: i32) -> (i32, i32) {
    %c0_i32 = arith.constant 0 : i32
    %c0_i32_0 = arith.constant 0 : i32
    %c0_i32_1 = arith.constant 0 : i32
    return %c0_i32, %c0_i32_0 : i32, i32
  }
  func.func @transform_5(%arg0: i32) -> (i32, i32) {
    %c0_i32 = arith.constant 0 : i32
    %c0_i32_0 = arith.constant 0 : i32
    %c0_i32_1 = arith.constant 0 : i32
    return %c0_i32, %c0_i32_0 : i32, i32
  }
  func.func @transform_6(%arg0: i32) -> (i32, i32, i32) {
    %c0_i32 = arith.constant 0 : i32
    %c0_i32_0 = arith.constant 0 : i32
    %c0_i32_1 = arith.constant 0 : i32
    return %arg0, %c0_i32, %c0_i32_0 : i32, i32, i32
  }
}

</mosaic_0001>

<bundles_post_ra>
// kernel: tpu_custom_call.1
= control target key start
LH: loop header
LB: loop body
LE: loop exit
PB: predicated region body
PF: predicated region fallthrough
CT: control target
= control target key end

     0   :  { %11 = vsyncpa [#allocation3], 0  ;;  %s1473_s0 = inlined_call_operand.hbm [shape: f32[2,4,256], index: 0, kind: input, shape index: {}]   ;;  %s1474_s1 = inlined_call_operand.vmem [shape: f32[4,36], index: 1, kind: input, shape index: {}]   ;;  %s1475_s2 = inlined_call_operand.vmem [shape: f32[4,1], index: 2, kind: input, shape index: {}]   ;;  %s1476_s3 = inlined_call_operand.vmem [shape: f32[4,36], index: 3, kind: input, shape index: {}]   ;;  %s1477_s4 = inlined_call_operand.vmem [shape: f32[4,1], index: 4, kind: input, shape index: {}]   ;;  %s1478_s5 = inlined_call_operand.hbm [shape: f32[36,256], index: 5, kind: input, shape index: {}]   ;;  %s1479_s6 = inlined_call_operand.hbm [shape: f32[2,4,256], index: 6, kind: output, shape index: {}]  }
   0x1   :  { %13 = vsyncpa [#allocation3 + $0x1], 0 }
   0x2   :  { %14 = vsyncpa [#allocation6], 0 }
   0x3   :  { %15 = vsyncpa [#allocation4], 0 }
   0x4   :  { %17 = vsyncpa [#allocation4 + $0x1], 0  ;;  %s1057_s21 = smov 0   ;;  %s1059_s22 = smov 0  }
   0x5   :  { %s1061_s23 = smov 0   ;;  %s1063_s24 = smov 0  }
   0x6 LB: > { %s1078_s25 = sadd.s32 4294967295, %s1005_s24   ;;  %s766_s26 = sadd.s32 4294967294, %s1005_s24   ;;  %s1005_s24 = sphi %s1063_s24, %s1499_s24   ;;  %s1001_s23 = sphi %s1061_s23, %s1498_s23   ;;  %s997_s22 = sphi %s1059_s22, %s1497_s22   ;;  %s993_s21 = sphi %s1057_s21, %s1496_s21  }
   0x7   : > { %p43_p0 = scmp.ne.s32.totalorder %s997_s22, %s993_s21  ;;  %p1480_p1 = scmp.eq.s32.totalorder %s1078_s25, 0 }
   0x8   : > { %p178_p3 = scmp.eq.s32.totalorder %s766_s26, 1  ;;  %p767_p5 = scmp.ge.s32.totalorder %s1005_s24, 1 }
   0x9   : > { %p1087_p4 = por %p1480_p1, %p43_p0  ;;  %p185_p7 = scmp.lt.s32.totalorder %s1005_s24, 3 }
   0xa   : > { %p1092_p6 = por %p178_p3, %p43_p0  ;;  %s1007_s30 = smov [#allocation5]  }
   0xb   : > { %s1483_s27 = scalar_select %p1087_p4, 1, 0 }
   0xc   : > { %s1484_s28 = scalar_select %p1092_p6, 1, 0 }
   0xd   : > { %p1097_p8 = pnand %p767_p5, %p185_p7  ;;  %s209_s7 = sshll.u32 %s1007_s30, 4  ;;  %s1101_s7 = int_to_ptr.vmem [resolvable:$true] %s209_s7 }
   0xe   : > { %s1113_s9 = sadd.s32 1, %s1005_s24   ;;  %s30_s10 = sadd.s32 1, %s1001_s23 }
   0xf   : > { %s1485_s29 = scalar_select %p1097_p8, 1, 0 }
  0x10   : > { %p814_p9 = pneg %p1097_p8  ;;  %s27_s11 = ssub.s32 %s1005_s24, %s1113_s9 }
  0x11   : > { %s877_s14 = scalar_lea.hbm %s1478_s5, 1280 }
  0x12   : > { %p1108_p11 = pnand %p814_p9, %p1480_p1  ;;  %p878_p12 = scmp.ne.s32.totalorder %s1478_s5, %s877_s14 }
  0x13   : > { %p884_p5 = scmp.lt.u32.totalorder %s877_s14, %s1478_s5 }
  0x14   : > { %p879_p13 = pneg %p1108_p11 }
  0x16   : > { %p880_p0 = pnand %p879_p13, %p878_p12 }
  0x18   : > { %p881_p3 = pneg %p880_p0 }
  0x1a   : > { %p886_p7 = pnand %p884_p5, %p881_p3 }
  0x1c   : > { %889 = shalt.err (!%p886_p7)
}
  0x1d   : > { %s890_s19 = scalar_lea.vmem %s1101_s7, 1280  ;;  %p898_p2 = scmp.lt.s32.totalorder %s1101_s7, %s1101_s7 }
  0x1e   : > { %p891_p9 = scmp.ne.s32.totalorder %s1101_s7, %s890_s19  ;;  %p899_p6 = scmp.lt.s32.totalorder %s890_s19, %s890_s19 }
  0x20   : > { %p893_p10 = pnand %p891_p9, %p879_p13  ;;  %p900_p4 = por %p899_p6, %p898_p2 }
  0x22   : > { %p894_p1 = pneg %p893_p10 }
  0x24   : > { %p901_p8 = pnand %p900_p4, %p894_p1 }
  0x26   : > { %904 = shalt.err (!%p901_p8)
}
  0x27   : > { %s1008_s20 = smov 256   ;;  %s1009_s26 = smov 16  }
  0x28   : > { %817 = dma.hbm_to_vmem [thread:$0]  (!%p1108_p11), %s1478_s5, 1280, %s1101_s7, [#allocation6], %s1008_s20, %s1008_s20, %s1009_s26  }
  0x29   : > { %p28_p2 = scmp.eq.s32.totalorder %s27_s11, 0  ;;  %p37_p1 = scmp.ne.s32.totalorder %s1001_s23, %s997_s22 }
  0x2a   : > { %p38_p4 = scmp.eq.s32.totalorder %s1005_s24, 0  ;;  %p827_p6 = scmp.lt.s32.totalorder %s1005_s24, 2 }
  0x2b   : > { %s1144_s13 = scalar_select %p28_p2, %s1001_s23, %s30_s10  }
  0x2c   : > { %p39_p8 = por %p38_p4, %p37_p1  ;;  %p1487_p10 = scmp.eq.s32.totalorder %s1078_s25, 1 }
  0x2d   : > { %s223_s15 = sand.u32 1, %s1001_s23   ;;  %s788_s16 = sshll.u32 %s1005_s24, 7 }
  0x2e   : > { %p1148_p12 = por %p1487_p10, %p37_p1  ;;  %s770_s17 = sshll.u32 %s223_s15, 3 }
  0x2f   : > { %s1157_s19 = scalar_lea.hbm %s1473_s0, %s788_s16  ;;  %s227_s7 = scalar_lea.vmem [#allocation2], %s770_s17 }
  0x30   : > { %s235_s10 = sshll.u32 %s227_s7, 4  ;;  %p1159_p11 = pnand %p827_p6, %p39_p8  ;;  %s1163_s10 = int_to_ptr.vmem [resolvable:$true] %s235_s10 }
  0x31   : > { %s224_s20 = scalar_lea.sflag [#allocation3], %s223_s15  ;;  %s905_s26 = scalar_lea.hbm %s1157_s19, 128 }
  0x32   : > { %p906_p13 = scmp.ne.s32.totalorder %s1157_s19, %s905_s26  ;;  %p907_p0 = pneg %p1159_p11 }
  0x33   : > { %s910_s16 = scalar_lea.hbm %s1473_s0, 256  ;;  %p911_p7 = scmp.lt.u32.totalorder %s1157_s19, %s1473_s0 }
  0x34   : > { %p908_p3 = pnand %p907_p0, %p906_p13  ;;  %p912_p9 = scmp.lt.u32.totalorder %s910_s16, %s905_s26 }
  0x35   : > { %p914_p1 = scmp.lt.u32.totalorder %s905_s26, %s1157_s19 }
  0x36   : > { %p909_p5 = pneg %p908_p3  ;;  %p913_p2 = por %p912_p9, %p911_p7 }
  0x38   : > { %p915_p4 = por %p914_p1, %p913_p2 }
  0x3a   : > { %p916_p6 = pnand %p915_p4, %p909_p5 }
  0x3c   : > { %919 = shalt.err (!%p916_p6)
}
  0x3d   : > { %s920_s15 = scalar_lea.vmem %s1163_s10, 128  ;;  %s1010_s18 = smov [#allocation2]  }
  0x3e   : > { %p921_p8 = scmp.ne.s32.totalorder %s1163_s10, %s920_s15  ;;  %s925_s7 = sshll.u32 %s1010_s18, 4  ;;  %s926_s7 = int_to_ptr.vmem [resolvable:$false] %s925_s7 }
  0x3f   : > { %s927_s30 = scalar_lea.vmem %s926_s7, 256  ;;  %p928_p3 = scmp.lt.s32.totalorder %s1163_s10, %s926_s7 }
  0x40   : > { %p923_p10 = pnand %p921_p8, %p907_p0  ;;  %p929_p7 = scmp.lt.s32.totalorder %s927_s30, %s920_s15 }
  0x42   : > { %p924_p13 = pneg %p923_p10  ;;  %p930_p9 = por %p929_p7, %p928_p3 }
  0x44   : > { %p931_p2 = pnand %p930_p9, %p924_p13 }
  0x46   : > { %934 = shalt.err (!%p931_p2)
}
  0x47   : > { %821 = dma.hbm_to_vmem [thread:$0]  (!%p1159_p11), %s1157_s19, 128, %s1163_s10, %s224_s20  }
  0x48   : > { %p1490_p5 = scmp.ne.s32.totalorder %s1485_s29, 0 }
  0x49   : > { %s1193_s26 = sand.u32 (!%p1490_p5), 1, %s997_s22   ;;  %p1491_p0 = scmp.ne.s32.totalorder (!%p1490_p5), %s1483_s27, 0 }
  0x4a   : > { %244 = sbr.rel (%p1490_p5) target bundleno = 841 (0x349), region = 44  ;;  %s774_s12 = sshll.u32 (!%p1490_p5), %s1193_s26, 3 }
  0x4b   : > { %s247_s16 = scalar_lea.sflag (!%p1490_p5), [#allocation3], %s1193_s26  ;;  %s250_s17 = scalar_lea.vmem (!%p1490_p5), [#allocation2], %s774_s12 }
  0x51   : > { %980 = dma.done.wait (%p1491_p0), %s247_s16, 128  }
  0x52   : > { %982 = vsyncadd (%p1491_p0), %s247_s16, 4294967168  ;;  %p1492_p11 = scmp.eq.s32.totalorder %s1078_s25, 0 }
  0x54   : > { %984 = dma.done.wait (%p1492_p11), [#allocation6], 1280   ;;  %p1493_p1 = pmov %p1492_p11 }
  0x55   : > { %v1207_v0 = vld [vmem:[%s250_s17] sm:$0xff]  ;;  %s1011_s29 = smov 1   ;;  %s1012_s19 = smov 16   ;;  %v1017_v2 = vmov 0.0   ;;  %v1019_v3 = vmov 0   ;;  %v305_v5 = vlaneseq  ;;  %vm383_vm3 = vcmask 1043456  }
  0x56   : > { %986 = vsyncadd (%p1493_p1), [#allocation6], 4294966016  ;;  %324 = vrot.lane.b32.xlu1 %v1207_v0, %s1011_s29  ;;  %310 = vrot.lane.b32.xlu0 %v1207_v0, %s1012_s19  ;;  %v1215_v1 = vcombine.high %v1207_v0, %v1207_v0  ;;  %s1013_s27 = smov 17   ;;  %s1014_s10 = smov 15   ;;  %v286_v4 = vld [vmem:[%s1475_s2] sm:$0xf] }
  0x57   : > { %s1015_s11 = smov 127   ;;  %s1016_s20 = smov 112   ;;  %481 = vmatprep.mubr.f32.mxu0 %v1017_v2  ;;  %658 = vmatprep.mubr.f32.mxu1 %v1017_v2  ;;  %v1248_v8 = vand.u32 127, %v305_v5  ;;  %v1266_v21 = vld [vmem:[#allocation5 + $0x8] sm:$0xff]  ;;  %v1268_v26 = vld [vmem:[#allocation5 + $0x18] sm:$0xff]  ;;  %v1271_v28 = vld [vmem:[#allocation5] sm:$0xff] }
  0x58   : > { %s1018_s8 = smov 113   ;;  %875 = vset.pattern.permute.xlu0 %v1019_v3  ;;  %s1020_s15 = smov 111   ;;  %v1273_v29 = vld [vmem:[#allocation5 + $0x10] sm:$0xff]  ;;  %v1297_v51 = vld [vmem:[#allocation5 + $0x28] sm:$0xff]  ;;  %v1305_v58 = vld [vmem:[#allocation5 + $0x38] sm:$0xff]  ;;  %vm407_vm9 = vcmask 293888  }
  0x59   : > { %vm328_vm0 = vcmp.lt.s32.totalorder %v1248_v8, 1  ;;  %vm314_vm1 = vcmp.lt.s32.totalorder %v1248_v8, 16  ;;  %vm307_vm2 = vcmp.lt.s32.totalorder %v1248_v8, 17  ;;  %vm321_vm4 = vcmp.lt.s32.totalorder %v1248_v8, 15  ;;  %v1303_v57 = vld [vmem:[#allocation5 + $0x30] sm:$0xff]  ;;  %v1307_v60 = vld [vmem:[#allocation5 + $0x20] sm:$0xff] }
  0x5a   : > { %301 = vrot.lane.b32.xlu0 %v1207_v0, %s1013_s27  ;;  %326 = vrot.lane.b32.xlu1 %v1215_v1, %s1011_s29  ;;  %vm335_vm5 = vcmp.lt.s32.totalorder %v1248_v8, 127  ;;  %vm349_vm6 = vcmp.lt.s32.totalorder %v1248_v8, 112  ;;  %vm342_vm7 = vcmp.lt.s32.totalorder %v1248_v8, 113  ;;  %vm356_vm8 = vcmp.lt.s32.totalorder %v1248_v8, 111  ;;  %v1319_v5 = vld [vmem:[#allocation5 + $0x48] sm:$0xf] }
  0x5b   : > { %s672_s7 = scalar_lea.sflag [#allocation4], %s1193_s26 }
  0x5e   : > { %303 = vrot.lane.b32.xlu1 %v1215_v1, %s1013_s27  ;;  %312 = vrot.lane.b32.xlu0 %v1215_v1, %s1012_s19 }
  0x62   : > { %319 = vrot.lane.b32.xlu1 %v1215_v1, %s1014_s10  ;;  %317 = vrot.lane.b32.xlu0 %v1207_v0, %s1014_s10 }
  0x66   : > { %333 = vrot.lane.b32.xlu1 %v1215_v1, %s1015_s11  ;;  %331 = vrot.lane.b32.xlu0 %v1207_v0, %s1015_s11 }
  0x6a   : > { %347 = vrot.lane.b32.xlu1 %v1215_v1, %s1016_s20  ;;  %345 = vrot.lane.b32.xlu0 %v1207_v0, %s1016_s20 }
  0x6e   : > { %340 = vrot.lane.b32.xlu1 %v1215_v1, %s1018_s8  ;;  %338 = vrot.lane.b32.xlu0 %v1207_v0, %s1018_s8 }
  0x72   : > { %354 = vrot.lane.b32.xlu1 %v1215_v1, %s1020_s15  ;;  %352 = vrot.lane.b32.xlu0 %v1207_v0, %s1020_s15 }
  0x76   : > { %404 = vperm.xlu0 %875, %v286_v4  }
  0xc8   : > { %v325_v6 = vpop.permute.xlu1 %324  ;;  %v311_v7 = vpop.permute.xlu0 %310 }
  0xcc   : > { %v302_v9 = vpop.permute.xlu0 %301  ;;  %v327_v10 = vpop.permute.xlu1 %326 }
  0xcd   : > { %v329_v13 = vsel %vm328_vm0, %v325_v6, %v327_v10  ;;  %v330_v14 = vsel %vm328_vm0, %v327_v10, %v325_v6 }
  0xce   : > { %v367_v22 = vrot.slane %v330_v14, 4  ;;  %v368_v23 = vrot.slane %v329_v13, 4 }
  0xd0   : > { %v304_v11 = vpop.permute.xlu1 %303  ;;  %v313_v12 = vpop.permute.xlu0 %312 }
  0xd1   : > { %v315_v15 = vsel %vm314_vm1, %v311_v7, %v313_v12  ;;  %v316_v16 = vsel %vm314_vm1, %v313_v12, %v311_v7  ;;  %v308_v19 = vsel %vm307_vm2, %v302_v9, %v304_v11  ;;  %v309_v20 = vsel %vm307_vm2, %v304_v11, %v302_v9  ;;  %v1322_v11 = vld [vmem:[#allocation5 + $0x40] sm:$0xf] }
  0xd2   : > { %v361_v17 = vrot.slane %v316_v16, 4  ;;  %v362_v18 = vrot.slane %v315_v15, 4 }
  0xd4   : > { %v320_v24 = vpop.permute.xlu1 %319  ;;  %v318_v25 = vpop.permute.xlu0 %317  ;;  %v385_v27 = vsel %vm383_vm3, %v308_v19, %v362_v18  ;;  %v384_v30 = vsel %vm383_vm3, %v309_v20, %v361_v17  ;;  %v284_v17 = vld [vmem:[%s1474_s1] sm:$0xf] }
  0xd5   : > { %v322_v31 = vsel %vm321_vm4, %v318_v25, %v320_v24  ;;  %v323_v32 = vsel %vm321_vm4, %v320_v24, %v318_v25  ;;  %v393_v35 = vmul.f32 %v385_v27, %v1266_v21  ;;  %v392_v37 = vmul.f32 %v384_v30, %v1271_v28  ;;  %v287_v27 = vld [vmem:[%s1477_s4] sm:$0xf] }
  0xd6   : > { %v386_v33 = vsel %vm383_vm3, %v323_v32, %v367_v22  ;;  %v387_v34 = vsel %vm383_vm3, %v322_v31, %v368_v23 }
  0xd7   : > { %v395_v36 = vmul.f32 %v387_v34, %v1268_v26  ;;  %v394_v38 = vmul.f32 %v386_v33, %v1273_v29 }
  0xd8   : > { %v334_v39 = vpop.permute.xlu1 %333  ;;  %v332_v40 = vpop.permute.xlu0 %331 }
  0xd9   : > { %v336_v41 = vsel %vm335_vm5, %v332_v40, %v334_v39  ;;  %v337_v42 = vsel %vm335_vm5, %v334_v39, %v332_v40  ;;  %v790_v43 = vpack.c.bf16 %v395_v36, %v393_v35  ;;  %v792_v44 = vpack.c.bf16 %v394_v38, %v392_v37 }
  0xda   : > { %v373_v45 = vrot.slane %v336_v41, 4  ;;  %v374_v46 = vrot.slane %v337_v42, 4 }
  0xdb   : > { %791 = vmatprep.subr.bf16.mxu0 %v790_v43 }
  0xdc   : > { %v348_v47 = vpop.permute.xlu1 %347  ;;  %793 = vmatpush1.bf16.msra.mxu0 %v792_v44  ;;  %v346_v48 = vpop.permute.xlu0 %345  ;;  %v388_v52 = vsel %vm383_vm3, %v1207_v0, %v373_v45  ;;  %v389_v53 = vsel %vm383_vm3, %v1215_v1, %v374_v46 }
  0xdd   : > { %v350_v49 = vsel %vm349_vm6, %v346_v48, %v348_v47  ;;  %v351_v50 = vsel %vm349_vm6, %v348_v47, %v346_v48  ;;  %v397_v4 = vmul.f32 %v389_v53, %v1297_v51  ;;  %v396_v6 = vmul.f32 %v388_v52, %v1307_v60 }
  0xde   : > { %v379_v54 = vrot.slane %v350_v49, 4  ;;  %v380_v55 = vrot.slane %v351_v50, 4 }
  0xe0   : > { %v341_v56 = vpop.permute.xlu1 %340  ;;  %v339_v59 = vpop.permute.xlu0 %338 }
  0xe1   : > { %v343_v61 = vsel %vm342_vm7, %v339_v59, %v341_v56  ;;  %v344_v62 = vsel %vm342_vm7, %v341_v56, %v339_v59 }
  0xe2   : > { %v390_v63 = vsel %vm383_vm3, %v343_v61, %v379_v54  ;;  %v391_v1 = vsel %vm383_vm3, %v344_v62, %v380_v55 }
  0xe3   : > { %v398_v2 = vmul.f32 %v390_v63, %v1303_v57  ;;  %v399_v3 = vmul.f32 %v391_v1, %v1305_v58 }
  0xe4   : > { %v355_v7 = vpop.permute.xlu1 %354  ;;  %v353_v9 = vpop.permute.xlu0 %352 }
  0xe5   : > { %v794_v10 = vpack.c.bf16 %v399_v3, %v397_v4  ;;  %v357_v12 = vsel %vm356_vm8, %v353_v9, %v355_v7  ;;  %v358_v13 = vsel %vm356_vm8, %v355_v7, %v353_v9  ;;  %v796_v14 = vpack.c.bf16 %v398_v2, %v396_v6 }
  0xe6   : > { %v401_v15 = vmul.f32 %v358_v13, %v1319_v5  ;;  %v400_v16 = vmul.f32 %v357_v12, %v1322_v11 }
  0xe7   : > { %795 = vmatprep.subr.bf16.mxu0 %v794_v10 }
  0xe8   : > { %797 = vmatpush1.bf16.msra.mxu0 %v796_v14 }
  0xe9   : > { %777 = vmatprep.subr.msk.mxu0 %vm383_vm3, %v401_v15 }
  0xec   : > { %778 = vmatpush1.msk.msra.mxu0 %vm383_vm3, %v400_v16 }
  0xed   : > { %779 = vmatmul.mubr.msk.f32.vlgmr.msra.gmra.mrb[0].mxu0 %vm407_vm9, %v284_v17 }
  0xf5   : > { %v405_v18 = vpop.permute.xlu0 %404 }
 0x1c0   : > { %v483_v19 = vpop.f32.mrb[0].mxu0 }
 0x1c1   : > { %v484_v20 = vadd.f32 %v483_v19, %v405_v18  ;;  %v485_v22 = vpop.f32.mrb[1].mxu0 }
 0x1c2   : > { %v486_v24 = vadd.f32 %v485_v22, %v405_v18 }
 0x1c3   : > { %v1336_v23 = vmax.f32 %v484_v20, 0.0 }
 0x1c4   : > { %v489_v25 = vmax.f32 %v486_v24, 0.0 }
 0x1c5   : > { %508 = vrot.lane.b32.xlu0 %v1336_v23, %s1011_s29  ;;  %496 = vrot.lane.b32.xlu1 %v1336_v23, %s1012_s19 }
 0x1c9   : > { %490 = vrot.lane.b32.xlu0 %v1336_v23, %s1013_s27  ;;  %498 = vrot.lane.b32.xlu1 %v489_v25, %s1012_s19 }
 0x1cd   : > { %502 = vrot.lane.b32.xlu0 %v1336_v23, %s1014_s10  ;;  %510 = vrot.lane.b32.xlu1 %v489_v25, %s1011_s29 }
 0x1d1   : > { %514 = vrot.lane.b32.xlu0 %v1336_v23, %s1015_s11  ;;  %492 = vrot.lane.b32.xlu1 %v489_v25, %s1013_s27 }
 0x1d5   : > { %526 = vrot.lane.b32.xlu0 %v1336_v23, %s1016_s20  ;;  %504 = vrot.lane.b32.xlu1 %v489_v25, %s1014_s10  ;;  %s789_s10 = sshll.u32 %s1078_s25, 7  ;;  %s1021_s25 = smov [#allocation7]  }
 0x1d6   : > { %s1429_s18 = scalar_lea.hbm %s1479_s6, %s789_s10 }
 0x1d9   : > { %520 = vrot.lane.b32.xlu0 %v1336_v23, %s1018_s8  ;;  %516 = vrot.lane.b32.xlu1 %v489_v25, %s1015_s11  ;;  %s282_s11 = scalar_lea.vmem [#allocation7], %s774_s12  ;;  %s939_s12 = sshll.u32 %s1021_s25, 4  ;;  %s940_s12 = int_to_ptr.vmem [resolvable:$false] %s939_s12 }
 0x1da   : > { %s941_s16 = scalar_lea.vmem %s940_s12, 256 }
 0x1dd   : > { %532 = vrot.lane.b32.xlu0 %v1336_v23, %s1020_s15  ;;  %528 = vrot.lane.b32.xlu1 %v489_v25, %s1016_s20  ;;  %s686_s20 = sshll.u32 %s282_s11, 4  ;;  %s1431_s20 = int_to_ptr.vmem [resolvable:$true] %s686_s20 }
 0x1de   : > { %s935_s30 = scalar_lea.vmem %s1431_s20, 128  ;;  %p942_p10 = scmp.lt.s32.totalorder %s1431_s20, %s940_s12 }
 0x1df   : > { %p936_p4 = scmp.ne.s32.totalorder %s1431_s20, %s935_s30  ;;  %p943_p13 = scmp.lt.s32.totalorder %s941_s16, %s935_s30 }
 0x1e1   : > { %582 = vperm.xlu0 %875, %v287_v27   ;;  %522 = vrot.lane.b32.xlu1 %v489_v25, %s1018_s8  ;;  %p937_p6 = pnand %p936_p4, %p1148_p12  ;;  %p944_p3 = por %p943_p13, %p942_p10 }
 0x1e3   : > { %p938_p8 = pneg %p937_p6 }
 0x1e5   : > { %534 = vrot.lane.b32.xlu1 %v489_v25, %s1020_s15  ;;  %p945_p7 = pnand %p944_p3, %p938_p8 }
 0x237   : > { %v509_v30 = vpop.permute.xlu0 %508  ;;  %v497_v31 = vpop.permute.xlu1 %496 }
 0x23b   : > { %v491_v32 = vpop.permute.xlu0 %490  ;;  %v499_v33 = vpop.permute.xlu1 %498 }
 0x23c   : > { %v500_v36 = vsel %vm314_vm1, %v497_v31, %v499_v33  ;;  %v501_v37 = vsel %vm314_vm1, %v499_v33, %v497_v31 }
 0x23d   : > { %v540_v43 = vrot.slane %v501_v37, 4  ;;  %v541_v44 = vrot.slane %v500_v36, 4 }
 0x23f   : > { %v503_v34 = vpop.permute.xlu0 %502  ;;  %v511_v35 = vpop.permute.xlu1 %510 }
 0x240   : > { %v512_v39 = vsel %vm328_vm0, %v509_v30, %v511_v35  ;;  %v513_v40 = vsel %vm328_vm0, %v511_v35, %v509_v30 }
 0x241   : > { %v546_v46 = vrot.slane %v513_v40, 4  ;;  %v547_v47 = vrot.slane %v512_v39, 4 }
 0x243   : > { %v493_v38 = vpop.permute.xlu1 %492  ;;  %v515_v45 = vpop.permute.xlu0 %514 }
 0x244   : > { %v494_v41 = vsel %vm307_vm2, %v491_v32, %v493_v38  ;;  %v495_v42 = vsel %vm307_vm2, %v493_v38, %v491_v32 }
 0x245   : > { %v562_v48 = vsel %vm383_vm3, %v495_v42, %v540_v43  ;;  %v563_v50 = vsel %vm383_vm3, %v494_v41, %v541_v44 }
 0x246   : > { %v571_v56 = vmul.f32 %v563_v50, %v1266_v21  ;;  %v570_v61 = vmul.f32 %v562_v48, %v1271_v28 }
 0x247   : > { %v505_v49 = vpop.permute.xlu1 %504  ;;  %v527_v63 = vpop.permute.xlu0 %526 }
 0x248   : > { %v506_v52 = vsel %vm321_vm4, %v503_v34, %v505_v49  ;;  %v507_v53 = vsel %vm321_vm4, %v505_v49, %v503_v34 }
 0x249   : > { %v564_v54 = vsel %vm383_vm3, %v507_v53, %v546_v46  ;;  %v565_v55 = vsel %vm383_vm3, %v506_v52, %v547_v47 }
 0x24a   : > { %v573_v59 = vmul.f32 %v565_v55, %v1268_v26  ;;  %v572_v62 = vmul.f32 %v564_v54, %v1273_v29 }
 0x24b   : > { %v517_v1 = vpop.permute.xlu1 %516  ;;  %v521_v29 = vpop.permute.xlu0 %520 }
 0x24c   : > { %v518_v2 = vsel %vm335_vm5, %v515_v45, %v517_v1  ;;  %v519_v3 = vsel %vm335_vm5, %v517_v1, %v515_v45  ;;  %v798_v4 = vpack.c.bf16 %v573_v59, %v571_v56  ;;  %v800_v6 = vpack.c.bf16 %v572_v62, %v570_v61 }
 0x24d   : > { %v552_v7 = vrot.slane %v518_v2, 4  ;;  %v553_v9 = vrot.slane %v519_v3, 4 }
 0x24e   : > { %799 = vmatprep.subr.bf16.mxu1 %v798_v4 }
 0x24f   : > { %801 = vmatpush1.bf16.msra.mxu1 %v800_v6  ;;  %v529_v21 = vpop.permute.xlu1 %528  ;;  %v566_v10 = vsel %vm383_vm3, %v1336_v23, %v552_v7  ;;  %v567_v12 = vsel %vm383_vm3, %v489_v25, %v553_v9  ;;  %v533_v25 = vpop.permute.xlu0 %532 }
 0x250   : > { %v530_v26 = vsel %vm349_vm6, %v527_v63, %v529_v21  ;;  %v531_v28 = vsel %vm349_vm6, %v529_v21, %v527_v63  ;;  %v575_v23 = vmul.f32 %v567_v12, %v1297_v51  ;;  %v574_v24 = vmul.f32 %v566_v10, %v1307_v60 }
 0x251   : > { %v558_v13 = vrot.slane %v530_v26, 4  ;;  %v559_v14 = vrot.slane %v531_v28, 4 }
 0x253   : > { %v523_v15 = vpop.permute.xlu1 %522 }
 0x254   : > { %v524_v16 = vsel %vm342_vm7, %v521_v29, %v523_v15  ;;  %v525_v17 = vsel %vm342_vm7, %v523_v15, %v521_v29 }
 0x255   : > { %v568_v18 = vsel %vm383_vm3, %v524_v16, %v558_v13  ;;  %v569_v19 = vsel %vm383_vm3, %v525_v17, %v559_v14 }
 0x256   : > { %v576_v20 = vmul.f32 %v568_v18, %v1303_v57  ;;  %v577_v22 = vmul.f32 %v569_v19, %v1305_v58  ;;  %v285_v58 = vld [vmem:[%s1476_s3] sm:$0xf] }
 0x257   : > { %v535_v27 = vpop.permute.xlu1 %534 }
 0x258   : > { %v537_v30 = vsel %vm356_vm8, %v535_v27, %v533_v25  ;;  %v802_v31 = vpack.c.bf16 %v577_v22, %v575_v23  ;;  %v804_v32 = vpack.c.bf16 %v576_v20, %v574_v24  ;;  %v536_v57 = vsel %vm356_vm8, %v533_v25, %v535_v27 }
 0x259   : > { %v579_v33 = vmul.f32 %v537_v30, %v1319_v5  ;;  %v578_v51 = vmul.f32 %v536_v57, %v1322_v11 }
 0x25a   : > { %803 = vmatprep.subr.bf16.mxu1 %v802_v31 }
 0x25b   : > { %805 = vmatpush1.bf16.msra.mxu1 %v804_v32 }
 0x25c   : > { %780 = vmatprep.subr.msk.mxu1 %vm383_vm3, %v579_v33 }
 0x25f   : > { %781 = vmatpush1.msk.msra.mxu1 %vm383_vm3, %v578_v51 }
 0x260   : > { %782 = vmatmul.mubr.msk.f32.vlgmr.msra.gmra.mrb[0].mxu1 %vm407_vm9, %v285_v58  ;;  %v583_v60 = vpop.permute.xlu0 %582 }
 0x333   : > { %v660_v5 = vpop.f32.mrb[0].mxu1 }
 0x334   : > { %v661_v8 = vadd.f32 %v660_v5, %v583_v60  ;;  %v662_v34 = vpop.f32.mrb[1].mxu1 }
 0x335   : > { %v663_v35 = vadd.f32 %v662_v34, %v583_v60 }
 0x337   : > { %v667_v11 = vcombine.low %v661_v8, %v663_v35 }
 0x339   : > { %v669_v36 = vadd.f32 %v667_v11, %v1207_v0 }
 0x33b   : > { %670 = vst [vmem:[%s282_s11] sm:$0xff] %v669_v36 }
 0x33c   : > { %948 = shalt.err (!%p945_p7)
}
 0x33d   : > { %s949_s26 = scalar_lea.hbm %s1429_s18, 128  ;;  %s953_s19 = scalar_lea.hbm %s1479_s6, 256 }
 0x33e   : > { %p950_p9 = scmp.ne.s32.totalorder %s1429_s18, %s949_s26  ;;  %p954_p0 = scmp.lt.u32.totalorder %s1429_s18, %s1479_s6 }
 0x33f   : > { %p955_p11 = scmp.lt.u32.totalorder %s953_s19, %s949_s26  ;;  %p957_p4 = scmp.lt.u32.totalorder %s949_s26, %s1429_s18 }
 0x340   : > { %p951_p2 = pnand %p950_p9, %p1148_p12 }
 0x341   : > { %p956_p1 = por %p955_p11, %p954_p0 }
 0x342   : > { %p952_p5 = pneg %p951_p2 }
 0x343   : > { %p958_p6 = por %p957_p4, %p956_p1 }
 0x345   : > { %p959_p8 = pnand %p958_p6, %p952_p5 }
 0x347   : > { %962 = shalt.err (!%p959_p8)
}
 0x348   : > { %812 = dma.vmem_to_hbm [thread:$0]  (%p1148_p12), %s1431_s20, 128, %s1429_s18, %s672_s7  }
 0x349 PF: > { %s698_s11 = sand.u32 1, %s993_s21   ;;  %p1494_p10 = scmp.ne.s32.totalorder %s1484_s28, 0 }
 0x34a   : > { %p1495_p13 = scmp.ge.s32.totalorder %s1005_s24, 2  ;;  %s699_s8 = scalar_lea.sflag [#allocation4], %s698_s11 }
 0x34c   : > { %p823_p3 = pnand %p1495_p13, %p1494_p10 }
 0x34e   : > { %988 = dma.done.wait (!%p823_p3), %s699_s8, 128  }
 0x34f   : > { %990 = vsyncadd (!%p823_p3), %s699_s8, 4294967168  ;;  %p20_p7 = scmp.ge.s32.totalorder %s1113_s9, 4   ;;  %s1496_s21 = smov %s997_s22 }
 0x350   : > { %s1497_s22 = smov %s1001_s23  ;;  %s1498_s23 = smov %s1144_s13 }
 0x351   : > { %s1499_s24 = smov %s1113_s9  ;;  %22 = sbr.rel (!%p20_p7) target bundleno = 6 (0x6), region = 93 }
 0x358   :  { %704 = vsyncpa [#allocation3], 1 }
 0x359   :  { %706 = vsyncpa [#allocation3 + $0x1], 1 }
 0x35a   :  { %707 = vsyncpa [#allocation6], 1 }
 0x35b   :  { %708 = vsyncpa [#allocation4], 1 }
 0x35c   :  { %710 = vsyncpa [#allocation4 + $0x1], 1 }

</bundles_post_ra>
